<compile_context>
chip_gen: v6e
topology: v6e:2x2x1
jax: 0.10.0
libtpu: 0.0.40
codegen_flags: <defaults>
</compile_context>

<pallas_src>
import jax
import jax.numpy as jnp
from jax.experimental import pallas as pl
from jax.experimental.pallas import tpu as pltpu

IN_FEATURES = 56
OUT_FEATURES = 8

# A (tile, <=128)-wide f32 block pads to tile x 128 lanes x 4 B in VMEM.
_PAD_BYTES_PER_ROW = 128 * 4


def model_kernel(x1_ref, c1_ref, c2_ref, wt_ref, b_ref, o_ref):
    """One grid step over a row tile.

    v1 = x1 @ W^T + b ; v2 = sigmoid(v1)
    v3 = v4 = c1 @ W^T + b ; v5 = c2 @ W^T + b
    out = v2*v3 + v3*v4 + v1*v5  ==  v3*(v2 + v3) + v1*v5
    """
    wt = wt_ref[...]                         # (56, 8)
    b = b_ref[...]                           # (1, 8), broadcasts over rows

    v1 = jnp.dot(x1_ref[...], wt, preferred_element_type=jnp.float32) + b
    v3 = jnp.dot(c1_ref[...], wt, preferred_element_type=jnp.float32) + b
    v5 = jnp.dot(c2_ref[...], wt, preferred_element_type=jnp.float32) + b

    v2 = jax.nn.sigmoid(v1)                  # EUP transcendental (free slot)
    out = v3 * (v2 + v3) + v1 * v5           # v4 == v3
    o_ref[...] = out.astype(o_ref.dtype)


def _vmem_capacity_bytes():
    """Physical per-core VMEM; conservative 64 MiB fallback (v7x)."""
    try:
        cap = int(pltpu.get_tpu_info().vmem_capacity_bytes)
        if cap > 0:
            return cap
    except Exception:
        pass
    return 64 * 1024 * 1024


def _per_row_vmem_bytes(n_input_buffers):
    # 3 input blocks x n buffers + output block x 2 buffers, plus ~5 row-slabs
    # of f32 temps (v1/v3/v5/sigmoid/mix) -- all lane-padded to 128.
    return (3 * n_input_buffers + 2 + 5) * _PAD_BYTES_PER_ROW


def _choose_tile(n, block_rows):
    if block_rows is not None:
        return max(1, min(block_rows, n))
    budget = int(_vmem_capacity_bytes() * 0.6)        # leave headroom for spills
    t = budget // _per_row_vmem_bytes(2)
    t = min(t, 8192, n)                               # ~8192 on v6e, ~4096 on v7x
    t = max(t, min(n, 256))
    if t < n:
        # Power-of-two tiles keep the (8, 128) constraint and >= 2 grid steps
        # (so the "parallel" batch axis can shard across v7x's 2 TensorCores).
        t = 1 << (t.bit_length() - 1)
    return t


def model_forward(x1, c1, c2, weight, bias, *, block_rows=None):
    """x1, c1, c2: (N, 56) f32; weight: (8, 56); bias: (8,). Returns (N, 8)."""
    n = x1.shape[0]
    tile = _choose_tile(n, block_rows)
    grid_steps = pl.cdiv(n, tile)
    grid = (grid_steps,)

    # Deepen the input pipeline only when tiles are small and the grid is long
    # (per-step DMA under ~1-2 us); otherwise plain double-buffering.
    deep = tile <= 1024 and grid_steps >= 4
    in_kwargs = dict(pipeline_mode=pl.Buffered(3)) if deep else {}
    n_buffers = 3 if deep else 2

    needed = tile * _per_row_vmem_bytes(n_buffers) + 8 * 1024 * 1024
    vmem_limit = min(max(32 * 1024 * 1024, needed), _vmem_capacity_bytes())

    wt = weight.T                             # (56, 8) for row-major matmul
    b2 = bias.reshape(1, OUT_FEATURES)        # 2-D for TPU lane layout

    cost = pl.CostEstimate(
        flops=2 * 3 * n * IN_FEATURES * OUT_FEATURES + 5 * n * OUT_FEATURES,
        transcendentals=n * OUT_FEATURES,
        bytes_accessed=4 * (3 * n * IN_FEATURES + n * OUT_FEATURES
                            + IN_FEATURES * OUT_FEATURES + OUT_FEATURES),
    )

    return pl.pallas_call(
        model_kernel,
        out_shape=jax.ShapeDtypeStruct((n, OUT_FEATURES), jnp.float32),
        grid=grid,
        in_specs=[
            pl.BlockSpec((tile, IN_FEATURES), lambda i: (i, 0), **in_kwargs),
            pl.BlockSpec((tile, IN_FEATURES), lambda i: (i, 0), **in_kwargs),
            pl.BlockSpec((tile, IN_FEATURES), lambda i: (i, 0), **in_kwargs),
            pl.BlockSpec((IN_FEATURES, OUT_FEATURES), lambda i: (0, 0)),
            pl.BlockSpec((1, OUT_FEATURES), lambda i: (0, 0)),
        ],
        out_specs=pl.BlockSpec((tile, OUT_FEATURES), lambda i: (i, 0)),
        compiler_params=pltpu.CompilerParams(
            dimension_semantics=("parallel",),
            vmem_limit_bytes=vmem_limit,
        ),
        cost_estimate=cost,
    )(x1, c1, c2, wt, b2)


def _reference(x1, c1, c2, weight, bias):
    v1 = x1 @ weight.T + bias
    v2 = jax.nn.sigmoid(v1)
    v3 = c1 @ weight.T + bias
    v4 = v3
    v5 = c2 @ weight.T + bias
    return v2 * v3 + v3 * v4 + v1 * v5


if __name__ == "__main__":
    key = jax.random.PRNGKey(0)
    k_x, k_c1, k_c2, k_w, k_b = jax.random.split(key, 5)

    N = 256  # small batch; block_rows=128 below exercises a 2-step grid
    x1 = jax.random.normal(k_x, (N, IN_FEATURES), dtype=jnp.float32)
    c1 = jax.random.normal(k_c1, (N, IN_FEATURES), dtype=jnp.float32)
    c2 = jax.random.normal(k_c2, (N, IN_FEATURES), dtype=jnp.float32)

    # Deterministic Linear(56, 8) init (PyTorch-style uniform bound 1/sqrt(fan_in)).
    bound = 1.0 / (IN_FEATURES ** 0.5)
    weight = jax.random.uniform(
        k_w, (OUT_FEATURES, IN_FEATURES), dtype=jnp.float32,
        minval=-bound, maxval=bound)
    bias = jax.random.uniform(
        k_b, (OUT_FEATURES,), dtype=jnp.float32, minval=-bound, maxval=bound)

    ref = _reference(x1, c1, c2, weight, bias)

    # Multi-step grid path (explicit small tile).
    out_tiled = model_forward(x1, c1, c2, weight, bias, block_rows=128)
    jax.block_until_ready(out_tiled)
    assert out_tiled.shape == (N, OUT_FEATURES)
    assert jnp.allclose(out_tiled, ref, atol=1e-4, rtol=1e-4), "tiled mismatch"

    # Auto-tiled path (VMEM-capacity-sized tile; single step at this small N).
    out_auto = model_forward(x1, c1, c2, weight, bias)
    jax.block_until_ready(out_auto)
    assert jnp.allclose(out_auto, ref, atol=1e-4, rtol=1e-4), "auto mismatch"

    print("KERNEL_OK")
</pallas_src>

<mosaic_0001>
module attributes {stable_mosaic.version = 11 : i64} {
  func.func @model_kernel(%arg0: i32, %arg1: memref<128x56xf32, #tpu.memory_space<vmem>>, %arg2: memref<128x56xf32, #tpu.memory_space<vmem>>, %arg3: memref<128x56xf32, #tpu.memory_space<vmem>>, %arg4: memref<56x8xf32, #tpu.memory_space<vmem>>, %arg5: memref<1x8xf32, #tpu.memory_space<vmem>>, %arg6: memref<128x8xf32, #tpu.memory_space<vmem>>) attributes {dimension_semantics = [#tpu.dimension_semantics<parallel>], iteration_bounds = array<i64: 2>, scalar_prefetch = 0 : i64, scratch_operands = 0 : i64, tpu.core_type = #tpu.core_type<tc>, window_params = [{transform_indices = @transform_0, window_bounds = array<i64: 128, 56>}, {transform_indices = @transform_1, window_bounds = array<i64: 128, 56>}, {transform_indices = @transform_2, window_bounds = array<i64: 128, 56>}, {pipeline_mode = #tpu.pipeline_mode<synchronous>, transform_indices = @transform_3, window_bounds = array<i64: 56, 8>}, {pipeline_mode = #tpu.pipeline_mode<synchronous>, transform_indices = @transform_4, window_bounds = array<i64: 1, 8>}, {transform_indices = @transform_5, window_bounds = array<i64: 128, 8>}]} {
    %c0 = arith.constant 0 : index
    %c0_0 = arith.constant 0 : index
    %0 = vector.load %arg4[%c0, %c0_0] : memref<56x8xf32, #tpu.memory_space<vmem>>, vector<56x8xf32>
    %c0_1 = arith.constant 0 : index
    %c0_2 = arith.constant 0 : index
    %1 = vector.load %arg5[%c0_1, %c0_2] : memref<1x8xf32, #tpu.memory_space<vmem>>, vector<1x8xf32>
    %c0_3 = arith.constant 0 : index
    %c0_4 = arith.constant 0 : index
    %2 = vector.load %arg1[%c0_3, %c0_4] : memref<128x56xf32, #tpu.memory_space<vmem>>, vector<128x56xf32>
    %cst = arith.constant dense<0.000000e+00> : vector<128x8xf32>
    %3 = tpu.matmul %2, %0, %cst {dimension_numbers = #tpu.dot_dimension_numbers<[1], [0], [0], [1], [0, 0, 1, 1], [], []>} : vector<128x56xf32>, vector<56x8xf32>, vector<128x8xf32> -> vector<128x8xf32>
    %4 = vector.broadcast %1 : vector<1x8xf32> to vector<128x8xf32>
    %5 = arith.addf %3, %4 : vector<128x8xf32>
    %c0_5 = arith.constant 0 : index
    %c0_6 = arith.constant 0 : index
    %6 = vector.load %arg2[%c0_5, %c0_6] : memref<128x56xf32, #tpu.memory_space<vmem>>, vector<128x56xf32>
    %cst_7 = arith.constant dense<0.000000e+00> : vector<128x8xf32>
    %7 = tpu.matmul %6, %0, %cst_7 {dimension_numbers = #tpu.dot_dimension_numbers<[1], [0], [0], [1], [0, 0, 1, 1], [], []>} : vector<128x56xf32>, vector<56x8xf32>, vector<128x8xf32> -> vector<128x8xf32>
    %8 = vector.broadcast %1 : vector<1x8xf32> to vector<128x8xf32>
    %9 = arith.addf %7, %8 : vector<128x8xf32>
    %c0_8 = arith.constant 0 : index
    %c0_9 = arith.constant 0 : index
    %10 = vector.load %arg3[%c0_8, %c0_9] : memref<128x56xf32, #tpu.memory_space<vmem>>, vector<128x56xf32>
    %cst_10 = arith.constant dense<0.000000e+00> : vector<128x8xf32>
    %11 = tpu.matmul %10, %0, %cst_10 {dimension_numbers = #tpu.dot_dimension_numbers<[1], [0], [0], [1], [0, 0, 1, 1], [], []>} : vector<128x56xf32>, vector<56x8xf32>, vector<128x8xf32> -> vector<128x8xf32>
    %12 = vector.broadcast %1 : vector<1x8xf32> to vector<128x8xf32>
    %13 = arith.addf %11, %12 : vector<128x8xf32>
    %14 = arith.negf %5 : vector<128x8xf32>
    %15 = math.exp %14 : vector<128x8xf32>
    %cst_11 = arith.constant 1.000000e+00 : f32
    %16 = vector.broadcast %cst_11 : f32 to vector<128x8xf32>
    %17 = arith.addf %16, %15 : vector<128x8xf32>
    %18 = arith.divf %16, %17 : vector<128x8xf32>
    %19 = arith.addf %18, %9 : vector<128x8xf32>
    %20 = arith.mulf %9, %19 : vector<128x8xf32>
    %21 = arith.mulf %5, %13 : vector<128x8xf32>
    %22 = arith.addf %20, %21 : vector<128x8xf32>
    %c0_12 = arith.constant 0 : index
    %c0_13 = arith.constant 0 : index
    %23 = vector.load %arg6[%c0_12, %c0_13] : memref<128x8xf32, #tpu.memory_space<vmem>>, vector<128x8xf32>
    tpu.vector_store %arg6[%c0_12, %c0_13], %22 {strides = array<i32>} : memref<128x8xf32, #tpu.memory_space<vmem>>, vector<128x8xf32>,
    return
  }
  func.func @transform_0(%arg0: i32) -> (i32, i32) {
    %c0_i32 = arith.constant 0 : i32
    %c0_i32_0 = arith.constant 0 : i32
    return %arg0, %c0_i32 : i32, i32
  }
  func.func @transform_1(%arg0: i32) -> (i32, i32) {
    %c0_i32 = arith.constant 0 : i32
    %c0_i32_0 = arith.constant 0 : i32
    return %arg0, %c0_i32 : i32, i32
  }
  func.func @transform_2(%arg0: i32) -> (i32, i32) {
    %c0_i32 = arith.constant 0 : i32
    %c0_i32_0 = arith.constant 0 : i32
    return %arg0, %c0_i32 : i32, i32
  }
  func.func @transform_3(%arg0: i32) -> (i32, i32) {
    %c0_i32 = arith.constant 0 : i32
    %c0_i32_0 = arith.constant 0 : i32
    %c0_i32_1 = arith.constant 0 : i32
    return %c0_i32, %c0_i32_0 : i32, i32
  }
  func.func @transform_4(%arg0: i32) -> (i32, i32) {
    %c0_i32 = arith.constant 0 : i32
    %c0_i32_0 = arith.constant 0 : i32
    %c0_i32_1 = arith.constant 0 : i32
    return %c0_i32, %c0_i32_0 : i32, i32
  }
  func.func @transform_5(%arg0: i32) -> (i32, i32) {
    %c0_i32 = arith.constant 0 : i32
    %c0_i32_0 = arith.constant 0 : i32
    return %arg0, %c0_i32 : i32, i32
  }
}

</mosaic_0001>

<bundles_post_ra>
// kernel: tpu_custom_call.1
= control target key start
LH: loop header
LB: loop body
LE: loop exit
PB: predicated region body
PF: predicated region fallthrough
CT: control target
= control target key end

     0   :  { %s1558_s18 = smov 0   ;;  %s1940_s0 = inlined_call_operand.vmem [shape: f32[256,56], index: 0, kind: input, shape index: {}]   ;;  %s1941_s1 = inlined_call_operand.vmem [shape: f32[256,56], index: 1, kind: input, shape index: {}]   ;;  %s1942_s2 = inlined_call_operand.vmem [shape: f32[256,56], index: 2, kind: input, shape index: {}]   ;;  %s1943_s3 = inlined_call_operand.vmem [shape: f32[56,8], index: 3, kind: input, shape index: {}]   ;;  %s1944_s4 = inlined_call_operand.vmem [shape: f32[1,8], index: 4, kind: input, shape index: {}]   ;;  %s1945_s5 = inlined_call_operand.vmem [shape: f32[256,8], index: 5, kind: output, shape index: {}]  }
   0x1 LB: > { %s1171_s19 = sadd.s32 4294967295, %s1526_s18   ;;  %p1175_p0 = scmp.ge.s32.totalorder %s1526_s18, 1  ;;  %s1526_s18 = sphi %s1558_s18, %s15_s18  }
   0x2   : > { %p210_p1 = scmp.lt.s32.totalorder %s1526_s18, 3 }
   0x4   : > { %p211_p2 = pnand %p1175_p0, %p210_p1 }
   0x5   : > { %s1176_s24 = sshll.u32 (!%p211_p2), %s1171_s19, 4 }
   0x6   : > { %214 = sbr.rel (%p211_p2) target bundleno = 292 (0x124), region = 40  ;;  %p249_p3 = scmp.lt.s32.totalorder (!%p211_p2), %s1176_s24, 31 }
   0xb   : > { %v278_v0 = vld [vmem:[%s1943_s3 + $0x30] sm:$0xff]  ;;  %v1572_v1 = vld [vmem:[%s1943_s3 + $0x28] sm:$0xff]  ;;  %v1577_v2 = vld [vmem:[%s1943_s3 + $0x20] sm:$0xff]  ;;  %s1947_s24 = smov (!%p249_p3, %s1176_s24), 31  ;;  %vm302_vm0 = vcmask 457728   ;;  %vm1074_vm1 = vcmask 64512  }
   0xc   : > { %1320 = vmatprep.subr.mxu0 %v278_v0  ;;  %1434 = vmatprep.subr.mxu1 %v278_v0  ;;  %v1586_v3 = vld [vmem:[%s1943_s3 + $0x18] sm:$0xff]  ;;  %v1595_v4 = vld [vmem:[%s1943_s3 + $0x10] sm:$0xff]  ;;  %s1597_s6 = sshll.u32 %s1947_s24, 3  ;;  %v1606_v5 = vld [vmem:[%s1943_s3 + $0x8] sm:$0xff] }
   0xd   : > { %1321 = vmatpush3.msra.mxu0 %v278_v0  ;;  %1441 = vmatpush3.msra.mxu1 %v278_v0  ;;  %s1614_s11 = scalar_lea.vmem %s1940_s0, %s1597_s6  ;;  %v1621_v6 = vld [vmem:[%s1943_s3] sm:$0xff]  ;;  %s1679_s16 = scalar_lea.vmem %s1941_s1, %s1597_s6 }
   0xe   : > { %1322 = vmatprep.subr.mxu0 %v1572_v1  ;;  %1435 = vmatprep.subr.mxu1 %v1572_v1  ;;  %v280_v7 = vld [vmem:[%s1614_s11] sm:$0xff]  ;;  %v281_v9 = vld [vmem:[%s1614_s11 + $0x8] sm:$0xff]  ;;  %v282_v11 = vld [vmem:[%s1614_s11 + $0x10] sm:$0xff]  ;;  %s1687_s20 = scalar_lea.vmem %s1942_s2, %s1597_s6  ;;  %s1854_s25 = scalar_lea.vmem %s1945_s5, %s1597_s6 }
   0xf   : > { %1323 = vmatpush3.msra.mxu0 %v1572_v1  ;;  %1442 = vmatpush3.msra.mxu1 %v1572_v1  ;;  %v288_v8 = vld [vmem:[%s1614_s11 + $0x40] sm:$0xff]  ;;  %v289_v10 = vld [vmem:[%s1614_s11 + $0x48] sm:$0xff]  ;;  %v290_v12 = vld [vmem:[%s1614_s11 + $0x50] sm:$0xff] }
  0x10   : > { %1324 = vmatprep.subr.mxu0 %v1577_v2  ;;  %1436 = vmatprep.subr.mxu1 %v1577_v2  ;;  %v291_v13 = vld [vmem:[%s1614_s11 + $0x58] sm:$0xff]  ;;  %v284_v15 = vld [vmem:[%s1614_s11 + $0x20] sm:$0xff]  ;;  %v293_v17 = vld [vmem:[%s1614_s11 + $0x68] sm:$0xff] }
  0x11   : > { %1325 = vmatpush3.msra.mxu0 %v1577_v2  ;;  %1443 = vmatpush3.msra.mxu1 %v1577_v2  ;;  %v283_v14 = vld [vmem:[%s1614_s11 + $0x18] sm:$0xff]  ;;  %v292_v16 = vld [vmem:[%s1614_s11 + $0x60] sm:$0xff]  ;;  %v285_v18 = vld [vmem:[%s1614_s11 + $0x28] sm:$0xff] }
  0x12   : > { %1326 = vmatprep.subr.mxu0 %v1586_v3  ;;  %1437 = vmatprep.subr.mxu1 %v1586_v3  ;;  %v286_v19 = vld [vmem:[%s1614_s11 + $0x30] sm:$0xff]  ;;  %v287_v21 = vld [vmem:[%s1614_s11 + $0x38] sm:$0xff]  ;;  %v496_v23 = vld [vmem:[%s1679_s16] sm:$0xff] }
  0x13   : > { %1327 = vmatpush3.msra.mxu0 %v1586_v3  ;;  %1444 = vmatpush3.msra.mxu1 %v1586_v3  ;;  %v294_v20 = vld [vmem:[%s1614_s11 + $0x70] sm:$0xff]  ;;  %v295_v22 = vld [vmem:[%s1614_s11 + $0x78] sm:$0xff]  ;;  %v705_v24 = vld [vmem:[%s1687_s20] sm:$0xff] }
  0x14   : > { %1328 = vmatprep.subr.mxu0 %v1595_v4  ;;  %1438 = vmatprep.subr.mxu1 %v1595_v4  ;;  %v497_v25 = vld [vmem:[%s1679_s16 + $0x8] sm:$0xff]  ;;  %v498_v27 = vld [vmem:[%s1679_s16 + $0x10] sm:$0xff]  ;;  %v499_v29 = vld [vmem:[%s1679_s16 + $0x18] sm:$0xff] }
  0x15   : > { %1329 = vmatpush3.msra.mxu0 %v1595_v4  ;;  %1445 = vmatpush3.msra.mxu1 %v1595_v4  ;;  %v706_v26 = vld [vmem:[%s1687_s20 + $0x8] sm:$0xff]  ;;  %v707_v28 = vld [vmem:[%s1687_s20 + $0x10] sm:$0xff]  ;;  %v708_v30 = vld [vmem:[%s1687_s20 + $0x18] sm:$0xff] }
  0x16   : > { %1330 = vmatprep.subr.mxu0 %v1606_v5  ;;  %1439 = vmatprep.subr.mxu1 %v1606_v5  ;;  %v500_v31 = vld [vmem:[%s1679_s16 + $0x20] sm:$0xff]  ;;  %v501_v33 = vld [vmem:[%s1679_s16 + $0x28] sm:$0xff]  ;;  %v502_v35 = vld [vmem:[%s1679_s16 + $0x30] sm:$0xff] }
  0x17   : > { %1331 = vmatpush3.msra.mxu0 %v1606_v5  ;;  %1446 = vmatpush3.msra.mxu1 %v1606_v5  ;;  %v709_v32 = vld [vmem:[%s1687_s20 + $0x20] sm:$0xff]  ;;  %v710_v34 = vld [vmem:[%s1687_s20 + $0x28] sm:$0xff]  ;;  %v711_v36 = vld [vmem:[%s1687_s20 + $0x30] sm:$0xff] }
  0x18   : > { %1332 = vmatprep.subr.mxu0 %v1621_v6  ;;  %1440 = vmatprep.subr.mxu1 %v1621_v6  ;;  %v503_v37 = vld [vmem:[%s1679_s16 + $0x38] sm:$0xff]  ;;  %v504_v39 = vld [vmem:[%s1679_s16 + $0x40] sm:$0xff]  ;;  %v505_v41 = vld [vmem:[%s1679_s16 + $0x48] sm:$0xff] }
  0x19   : > { %1333 = vmatpush3.msra.mxu0 %v1621_v6  ;;  %1447 = vmatpush3.msra.mxu1 %v1621_v6  ;;  %v712_v38 = vld [vmem:[%s1687_s20 + $0x38] sm:$0xff]  ;;  %v713_v40 = vld [vmem:[%s1687_s20 + $0x40] sm:$0xff]  ;;  %v714_v42 = vld [vmem:[%s1687_s20 + $0x48] sm:$0xff] }
  0x1a   : > { %1334 = vmatprep.mubr.msk.f32.mxu0 %vm302_vm0, %v280_v7  ;;  %1346 = vmatprep.mubr.msk.f32.mxu1 %vm302_vm0, %v288_v8  ;;  %v506_v43 = vld [vmem:[%s1679_s16 + $0x50] sm:$0xff]  ;;  %v507_v45 = vld [vmem:[%s1679_s16 + $0x58] sm:$0xff]  ;;  %v508_v47 = vld [vmem:[%s1679_s16 + $0x60] sm:$0xff] }
  0x1b   : > { %1335 = vmatmul.mubr.msk.f32.vlgmr.msra.gmra.mxu0 %vm302_vm0, %v281_v9  ;;  %1347 = vmatmul.mubr.msk.f32.vlgmr.msra.gmra.mxu1 %vm302_vm0, %v289_v10  ;;  %v715_v44 = vld [vmem:[%s1687_s20 + $0x50] sm:$0xff]  ;;  %v716_v46 = vld [vmem:[%s1687_s20 + $0x58] sm:$0xff]  ;;  %v717_v48 = vld [vmem:[%s1687_s20 + $0x60] sm:$0xff] }
  0x1c   : > { %1358 = vmatprep.subr.mxu1 %v278_v0  ;;  %1396 = vmatprep.subr.mxu0 %v278_v0  ;;  %v509_v49 = vld [vmem:[%s1679_s16 + $0x68] sm:$0xff]  ;;  %v510_v51 = vld [vmem:[%s1679_s16 + $0x70] sm:$0xff]  ;;  %v511_v53 = vld [vmem:[%s1679_s16 + $0x78] sm:$0xff] }
  0x1d   : > { %1359 = vmatpush3.msra.mxu1 %v278_v0  ;;  %1337 = vmatprep.mubr.msk.f32.mxu0 %vm302_vm0, %v282_v11  ;;  %v718_v50 = vld [vmem:[%s1687_s20 + $0x68] sm:$0xff]  ;;  %v719_v52 = vld [vmem:[%s1687_s20 + $0x70] sm:$0xff]  ;;  %v720_v54 = vld [vmem:[%s1687_s20 + $0x78] sm:$0xff] }
  0x1e   : > { %1349 = vmatprep.mubr.msk.f32.mxu1 %vm302_vm0, %v290_v12  ;;  %1360 = vmatprep.subr.mxu1 %v1572_v1  ;;  %v1766_v55 = vld [vmem:[%s1944_s4] ss:$0 sm:$0xff] }
  0x1f   : > { %1397 = vmatpush3.msra.mxu0 %v278_v0  ;;  %1350 = vmatmul.mubr.msk.f32.gmra.mxu1 %vm302_vm0, %v291_v13 }
  0x20   : > { %1338 = vmatmul.mubr.msk.f32.gmra.mxu0 %vm302_vm0, %v283_v14  ;;  %1361 = vmatpush3.msra.mxu1 %v1572_v1 }
  0x21   : > { %1398 = vmatprep.subr.mxu0 %v1572_v1  ;;  %1362 = vmatprep.subr.mxu1 %v1577_v2 }
  0x22   : > { %1399 = vmatpush3.msra.mxu0 %v1572_v1  ;;  %1363 = vmatpush3.msra.mxu1 %v1577_v2 }
  0x23   : > { %1400 = vmatprep.subr.mxu0 %v1577_v2  ;;  %1340 = vmatprep.mubr.msk.f32.mxu0 %vm302_vm0, %v284_v15 }
  0x24   : > { %1352 = vmatprep.mubr.msk.f32.mxu1 %vm302_vm0, %v292_v16  ;;  %1364 = vmatprep.subr.mxu1 %v1586_v3 }
  0x25   : > { %1401 = vmatpush3.msra.mxu0 %v1577_v2  ;;  %1353 = vmatmul.mubr.msk.f32.gmra.mxu1 %vm302_vm0, %v293_v17 }
  0x26   : > { %1341 = vmatmul.mubr.msk.f32.gmra.mxu0 %vm302_vm0, %v285_v18  ;;  %1365 = vmatpush3.msra.mxu1 %v1586_v3 }
  0x27   : > { %1402 = vmatprep.subr.mxu0 %v1586_v3  ;;  %1366 = vmatprep.subr.mxu1 %v1595_v4 }
  0x28   : > { %1403 = vmatpush3.msra.mxu0 %v1586_v3  ;;  %1343 = vmatprep.mubr.msk.f32.mxu0 %vm302_vm0, %v286_v19 }
  0x29   : > { %1404 = vmatprep.subr.mxu0 %v1595_v4  ;;  %1355 = vmatprep.mubr.msk.f32.mxu1 %vm302_vm0, %v294_v20 }
  0x2a   : > { %1367 = vmatpush3.msra.mxu1 %v1595_v4  ;;  %1405 = vmatpush3.msra.mxu0 %v1595_v4 }
  0x2b   : > { %1344 = vmatmul.mubr.msk.f32.gmra.mxu0 %vm302_vm0, %v287_v21  ;;  %1356 = vmatmul.mubr.msk.f32.gmra.mxu1 %vm302_vm0, %v295_v22 }
  0x2c   : > { %1368 = vmatprep.subr.mxu1 %v1606_v5  ;;  %1406 = vmatprep.subr.mxu0 %v1606_v5 }
  0x2d   : > { %1369 = vmatpush3.msra.mxu1 %v1606_v5  ;;  %1407 = vmatpush3.msra.mxu0 %v1606_v5 }
  0x2e   : > { %1370 = vmatprep.subr.mxu1 %v1621_v6  ;;  %1408 = vmatprep.subr.mxu0 %v1621_v6 }
  0x2f   : > { %1371 = vmatpush3.msra.mxu1 %v1621_v6  ;;  %1372 = vmatprep.mubr.msk.f32.mxu1 %vm302_vm0, %v496_v23 }
  0x30   : > { %1409 = vmatpush3.msra.mxu0 %v1621_v6  ;;  %1410 = vmatprep.mubr.msk.f32.mxu0 %vm302_vm0, %v705_v24 }
  0x31   : > { %1373 = vmatmul.mubr.msk.f32.vlgmr.msra.gmra.mxu1 %vm302_vm0, %v497_v25  ;;  %1411 = vmatmul.mubr.msk.f32.vlgmr.msra.gmra.mxu0 %vm302_vm0, %v706_v26 }
  0x32   : > { %1375 = vmatprep.mubr.msk.f32.mxu1 %vm302_vm0, %v498_v27  ;;  %1413 = vmatprep.mubr.msk.f32.mxu0 %vm302_vm0, %v707_v28 }
  0x35   : > { %1376 = vmatmul.mubr.msk.f32.gmra.mxu1 %vm302_vm0, %v499_v29  ;;  %1414 = vmatmul.mubr.msk.f32.gmra.mxu0 %vm302_vm0, %v708_v30 }
  0x36   : > { %1378 = vmatprep.mubr.msk.f32.mxu1 %vm302_vm0, %v500_v31  ;;  %1416 = vmatprep.mubr.msk.f32.mxu0 %vm302_vm0, %v709_v32 }
  0x39   : > { %1379 = vmatmul.mubr.msk.f32.gmra.mxu1 %vm302_vm0, %v501_v33  ;;  %1417 = vmatmul.mubr.msk.f32.gmra.mxu0 %vm302_vm0, %v710_v34 }
  0x3a   : > { %1381 = vmatprep.mubr.msk.f32.mxu1 %vm302_vm0, %v502_v35  ;;  %1419 = vmatprep.mubr.msk.f32.mxu0 %vm302_vm0, %v711_v36 }
  0x3d   : > { %1382 = vmatmul.mubr.msk.f32.gmra.mxu1 %vm302_vm0, %v503_v37  ;;  %1420 = vmatmul.mubr.msk.f32.gmra.mxu0 %vm302_vm0, %v712_v38 }
  0x3e   : > { %1384 = vmatprep.mubr.msk.f32.mxu1 %vm302_vm0, %v504_v39  ;;  %1422 = vmatprep.mubr.msk.f32.mxu0 %vm302_vm0, %v713_v40 }
  0x41   : > { %1385 = vmatmul.mubr.msk.f32.gmra.mxu1 %vm302_vm0, %v505_v41  ;;  %1423 = vmatmul.mubr.msk.f32.gmra.mxu0 %vm302_vm0, %v714_v42 }
  0x42   : > { %1387 = vmatprep.mubr.msk.f32.mxu1 %vm302_vm0, %v506_v43  ;;  %1425 = vmatprep.mubr.msk.f32.mxu0 %vm302_vm0, %v715_v44 }
  0x45   : > { %1388 = vmatmul.mubr.msk.f32.gmra.mxu1 %vm302_vm0, %v507_v45  ;;  %1426 = vmatmul.mubr.msk.f32.gmra.mxu0 %vm302_vm0, %v716_v46 }
  0x46   : > { %1390 = vmatprep.mubr.msk.f32.mxu1 %vm302_vm0, %v508_v47  ;;  %1428 = vmatprep.mubr.msk.f32.mxu0 %vm302_vm0, %v717_v48 }
  0x49   : > { %1391 = vmatmul.mubr.msk.f32.gmra.mxu1 %vm302_vm0, %v509_v49  ;;  %1429 = vmatmul.mubr.msk.f32.gmra.mxu0 %vm302_vm0, %v718_v50 }
  0x4a   : > { %1393 = vmatprep.mubr.msk.f32.mxu1 %vm302_vm0, %v510_v51  ;;  %1431 = vmatprep.mubr.msk.f32.mxu0 %vm302_vm0, %v719_v52 }
  0x4d   : > { %1394 = vmatmul.mubr.msk.f32.gmra.mxu1 %vm302_vm0, %v511_v53  ;;  %1432 = vmatmul.mubr.msk.f32.gmra.mxu0 %vm302_vm0, %v720_v54 }
  0xdb   : > { %v1336_v56 = vpop.f32.mrf.mxu0  ;;  %v1348_v57 = vpop.f32.mrf.mxu1 }
  0xdc   : > { %v1769_v58 = vadd.f32 %v1336_v56, %v1766_v55  ;;  %v1772_v59 = vadd.f32 %v1348_v57, %v1766_v55 }
  0xdd   : > { %v417_v60 = vpop.f32.mrf.mxu0  ;;  %v457_v61 = vpop.f32.mrf.mxu1 }
  0xde   : > { %v1234_v62 = vmul.f32 -1.442695, %v1769_v58  ;;  %v1242_v63 = vmul.f32 -1.442695, %v1772_v59  ;;  %v1777_v0 = vadd.f32 %v1766_v55, %v417_v60  ;;  %v1780_v1 = vadd.f32 %v1766_v55, %v457_v61 }
  0xdf   : > { %v1351_v2 = vpop.f32.mrf.mxu1 }
  0xe0   : > { %1456 = vpow2.f32 %v1234_v62  ;;  %v1233_v3 = vmul.f32 -1.442695, %v1777_v0  ;;  %v1241_v4 = vmul.f32 -1.442695, %v1780_v1  ;;  %v1339_v5 = vpop.f32.mrf.mxu0  ;;  %v1785_v6 = vadd.f32 %v1351_v2, %v1766_v55 }
  0xe1   : > { %1458 = vpow2.f32 %v1242_v63  ;;  %v1788_v7 = vadd.f32 %v1339_v5, %v1766_v55  ;;  %v467_v8 = vpop.f32.mrf.mxu1 }
  0xe2   : > { %1460 = vpow2.f32 %v1233_v3  ;;  %v1244_v9 = vmul.f32 -1.442695, %v1785_v6  ;;  %v427_v10 = vpop.f32.mrf.mxu0  ;;  %v1792_v11 = vadd.f32 %v1766_v55, %v467_v8 }
  0xe3   : > { %1462 = vpow2.f32 %v1241_v4  ;;  %v1236_v12 = vmul.f32 -1.442695, %v1788_v7  ;;  %v1796_v13 = vadd.f32 %v1766_v55, %v427_v10 }
  0xe4   : > { %1464 = vpow2.f32 %v1244_v9  ;;  %v1243_v14 = vmul.f32 -1.442695, %v1792_v11 }
  0xe5   : > { %1466 = vpow2.f32 %v1236_v12  ;;  %v1235_v15 = vmul.f32 -1.442695, %v1796_v13  ;;  %v1354_v16 = vpop.f32.mrf.mxu1 }
  0xe6   : > { %1468 = vpow2.f32 %v1243_v14  ;;  %v1342_v17 = vpop.f32.mrf.mxu0  ;;  %v1801_v18 = vadd.f32 %v1354_v16, %v1766_v55 }
  0xe7   : > { %1470 = vpow2.f32 %v1235_v15  ;;  %v1804_v19 = vadd.f32 %v1342_v17, %v1766_v55  ;;  %v477_v20 = vpop.f32.mrf.mxu1 }
  0xe8   : > { %v1246_v21 = vmul.f32 -1.442695, %v1801_v18  ;;  %v437_v22 = vpop.f32.mrf.mxu0  ;;  %v1808_v23 = vadd.f32 %v1766_v55, %v477_v20 }
  0xe9   : > { %v1238_v24 = vmul.f32 -1.442695, %v1804_v19  ;;  %v1812_v25 = vadd.f32 %v1766_v55, %v437_v22 }
  0xea   : > { %1472 = vpow2.f32 %v1246_v21  ;;  %v1245_v26 = vmul.f32 -1.442695, %v1808_v23 }
  0xeb   : > { %1474 = vpow2.f32 %v1238_v24  ;;  %v1237_v27 = vmul.f32 -1.442695, %v1812_v25  ;;  %v1345_v28 = vpop.f32.mrf.mxu0  ;;  %v1357_v29 = vpop.f32.mrf.mxu1 }
  0xec   : > { %1476 = vpow2.f32 %v1245_v26  ;;  %v1817_v39 = vadd.f32 %v1345_v28, %v1766_v55  ;;  %v1820_v42 = vadd.f32 %v1357_v29, %v1766_v55 }
  0xed   : > { %v1457_v30 = vpop.eup %1456  ;;  %1478 = vpow2.f32 %v1237_v27  ;;  %v447_v31 = vpop.f32.mrf.mxu0 }
  0xee   : > { %v487_v32 = vpop.f32.mrf.mxu1  ;;  %v1459_v33 = vpop.eup %1458  ;;  %v963_v34 = vadd.f32 1.0, %v1457_v30  ;;  %v1240_v52 = vmul.f32 -1.442695, %v1817_v39  ;;  %v1248_v54 = vmul.f32 -1.442695, %v1820_v42  ;;  %v1825_v61 = vadd.f32 %v1766_v55, %v447_v31 }
  0xef   : > { %v1461_v35 = vpop.eup %1460  ;;  %v971_v36 = vadd.f32 1.0, %v1459_v33  ;;  %v1828_v63 = vadd.f32 %v1766_v55, %v487_v32 }
  0xf0   : > { %v1463_v37 = vpop.eup %1462  ;;  %1480 = vrcp.f32 %v963_v34  ;;  %v962_v38 = vadd.f32 1.0, %v1461_v35  ;;  %v1239_v15 = vmul.f32 -1.442695, %v1825_v61 }
  0xf1   : > { %v1465_v40 = vpop.eup %1464  ;;  %v970_v41 = vadd.f32 1.0, %v1463_v37  ;;  %v1374_v43 = vpop.f32.mrf.mxu1  ;;  %v1247_v17 = vmul.f32 -1.442695, %v1828_v63 }
  0xf2   : > { %v1412_v44 = vpop.f32.mrf.mxu0  ;;  %v1467_v45 = vpop.eup %1466  ;;  %1482 = vrcp.f32 %v962_v38  ;;  %v973_v46 = vadd.f32 1.0, %v1465_v40  ;;  %v632_v24 = vadd.f32 %v1374_v43, %v1766_v55 }
  0xf3   : > { %v1469_v47 = vpop.eup %1468  ;;  %1484 = vrcp.f32 %v971_v36  ;;  %v965_v48 = vadd.f32 1.0, %v1467_v45  ;;  %v626_v49 = vpop.f32.mrf.mxu1  ;;  %v841_v20 = vadd.f32 %v1412_v44, %v1766_v55 }
  0xf4   : > { %v835_v50 = vpop.f32.mrf.mxu0  ;;  %v1471_v51 = vpop.eup %1470  ;;  %1486 = vrcp.f32 %v970_v41  ;;  %v972_v60 = vadd.f32 1.0, %v1469_v47  ;;  %v627_v33 = vadd.f32 %v1766_v55, %v626_v49 }
  0xf5   : > { %1488 = vrcp.f32 %v965_v48  ;;  %v964_v53 = vadd.f32 1.0, %v1471_v51  ;;  %v1377_v56 = vpop.f32.mrf.mxu1  ;;  %v836_v26 = vadd.f32 %v1766_v55, %v835_v50  ;;  %v1043_v36 = vmul.f32 %v841_v20, %v1769_v58 }
  0xf6   : > { %v1415_v57 = vpop.f32.mrf.mxu0  ;;  %1490 = vrcp.f32 %v973_v46  ;;  %v642_v46 = vadd.f32 %v1377_v56, %v1766_v55 }
  0xf7   : > { %v1473_v62 = vpop.eup %1472  ;;  %1492 = vrcp.f32 %v964_v53  ;;  %v636_v2 = vpop.f32.mrf.mxu1  ;;  %v851_v29 = vadd.f32 %v1415_v57, %v1766_v55  ;;  %v1042_v45 = vmul.f32 %v836_v26, %v1777_v0 }
  0xf8   : > { %v845_v3 = vpop.f32.mrf.mxu0  ;;  %v1475_v4 = vpop.eup %1474  ;;  %v975_v5 = vadd.f32 1.0, %v1473_v62  ;;  %1494 = vpow2.f32 %v1240_v52  ;;  %v637_v48 = vadd.f32 %v1766_v55, %v636_v2 }
  0xf9   : > { %v1477_v8 = vpop.eup %1476  ;;  %v967_v9 = vadd.f32 1.0, %v1475_v4  ;;  %1496 = vpow2.f32 %v1248_v54  ;;  %v1380_v10 = vpop.f32.mrf.mxu1  ;;  %v846_v34 = vadd.f32 %v1766_v55, %v845_v3  ;;  %v1045_v58 = vmul.f32 %v851_v29, %v1788_v7 }
  0xfa   : > { %v1418_v12 = vpop.f32.mrf.mxu0  ;;  %v1479_v14 = vpop.eup %1478  ;;  %1498 = vrcp.f32 %v972_v60  ;;  %v974_v28 = vadd.f32 1.0, %v1477_v8  ;;  %v652_v49 = vadd.f32 %v1380_v10, %v1766_v55 }
  0xfb   : > { %1500 = vrcp.f32 %v967_v9  ;;  %v966_v16 = vadd.f32 1.0, %v1479_v14  ;;  %v646_v21 = vpop.f32.mrf.mxu1  ;;  %v861_v37 = vadd.f32 %v1418_v12, %v1766_v55  ;;  %v1044_v54 = vmul.f32 %v846_v34, %v1796_v13 }
  0xfc   : > { %v855_v22 = vpop.f32.mrf.mxu0  ;;  %1502 = vrcp.f32 %v975_v5  ;;  %v1865_v7 = vadd.f32 %v1766_v55, %v646_v21 }
  0xfd   : > { %v1481_v27 = vpop.eup %1480  ;;  %1504 = vrcp.f32 %v966_v16  ;;  %v1836_v30 = vpop.f32.mrf.mxu1  ;;  %v1862_v62 = vmul.f32 %v861_v37, %v1804_v19 }
  0xfe   : > { %v1838_v31 = vpop.f32.mrf.mxu0  ;;  %1506 = vpow2.f32 %v1239_v15  ;;  %v1011_v32 = vadd.f32 %v1481_v27, %v632_v24  ;;  %v856_v15 = vadd.f32 %v1766_v55, %v855_v22 }
  0xff   : > { %v1483_v35 = vpop.eup %1482  ;;  %1508 = vpow2.f32 %v1247_v17  ;;  %v1844_v38 = vpop.f32.mrf.mxu1 }
 0x100   : > { %v1846_v40 = vpop.f32.mrf.mxu0  ;;  %v1485_v41 = vpop.eup %1484  ;;  %v1027_v43 = vmul.f32 %v1011_v32, %v632_v24  ;;  %v1010_v44 = vadd.f32 %v1483_v35, %v627_v33  ;;  %1510 = vrcp.f32 %v974_v28 }
 0x101   : > { %v1487_v47 = vpop.eup %1486  ;;  %v1386_v50 = vpop.f32.mrf.mxu1 }
 0x102   : > { %v1424_v51 = vpop.f32.mrf.mxu0  ;;  %v1489_v52 = vpop.eup %1488  ;;  %v1059_v0 = vadd.f32 %v1043_v36, %v1027_v43  ;;  %v1026_v53 = vmul.f32 %v1010_v44, %v627_v33  ;;  %v672_v56 = vadd.f32 %v1386_v50, %v1766_v55 }
 0x103   : > { %v1491_v57 = vpop.eup %1490  ;;  %v1013_v60 = vadd.f32 %v1489_v52, %v642_v46  ;;  %v881_v2 = vadd.f32 %v1424_v51, %v1766_v55  ;;  %v666_v3 = vpop.f32.mrf.mxu1 }
 0x104   : > { %v875_v4 = vpop.f32.mrf.mxu0  ;;  %v1493_v5 = vpop.eup %1492  ;;  %1076 = vst.msk [vmem:[%s1854_s25 + $0x8] sm:$0xff] %vm1074_vm1, %v1059_v0  ;;  %v1058_v8 = vadd.f32 %v1042_v45, %v1026_v53  ;;  %v1019_v13 = vadd.f32 %v1485_v41, %v672_v56  ;;  %v667_v9 = vadd.f32 %v1766_v55, %v666_v3 }
 0x105   : > { %v876_v10 = vadd.f32 %v1766_v55, %v875_v4  ;;  %v1495_v12 = vpop.eup %1494  ;;  %v1029_v19 = vmul.f32 %v1013_v60, %v642_v46  ;;  %v1012_v14 = vadd.f32 %v1493_v5, %v637_v48  ;;  %v1051_v16 = vmul.f32 %v881_v2, %v1772_v59  ;;  %v1389_v17 = vpop.f32.mrf.mxu1 }
 0x106   : > { %v1427_v20 = vpop.f32.mrf.mxu0  ;;  %v1497_v21 = vpop.eup %1496  ;;  %v969_v24 = vadd.f32 1.0, %v1495_v12  ;;  %1075 = vst.msk [vmem:[%s1854_s25] sm:$0xff] %vm1074_vm1, %v1058_v8  ;;  %v1035_v26 = vmul.f32 %v1019_v13, %v672_v56  ;;  %v1018_v27 = vadd.f32 %v1487_v47, %v667_v9  ;;  %v682_v35 = vadd.f32 %v1389_v17, %v1766_v55 }
 0x107   : > { %v1050_v28 = vmul.f32 %v876_v10, %v1780_v1  ;;  %v1499_v29 = vpop.eup %1498  ;;  %v977_v32 = vadd.f32 1.0, %v1497_v21  ;;  %v1061_v33 = vadd.f32 %v1045_v58, %v1029_v19  ;;  %v1028_v34 = vmul.f32 %v1012_v14, %v637_v48  ;;  %v676_v22 = vpop.f32.mrf.mxu1 }
 0x108   : > { %v885_v59 = vpop.f32.mrf.mxu0  ;;  %v1501_v36 = vpop.eup %1500  ;;  %1512 = vrcp.f32 %v969_v24  ;;  %v1067_v37 = vadd.f32 %v1051_v16, %v1035_v26  ;;  %v1034_v41 = vmul.f32 %v1018_v27, %v667_v9  ;;  %v891_v43 = vadd.f32 %v1427_v20, %v1766_v55 }
 0x109   : > { %v1503_v44 = vpop.eup %1502  ;;  %1514 = vrcp.f32 %v977_v32  ;;  %1078 = vst.msk [vmem:[%s1854_s25 + $0x18] sm:$0xff] %vm1074_vm1, %v1061_v33  ;;  %v1060_v1 = vadd.f32 %v1044_v54, %v1028_v34  ;;  %v1015_v45 = vadd.f32 %v1501_v36, %v652_v49  ;;  %v1021_v46 = vadd.f32 %v1491_v57, %v682_v35  ;;  %v1392_v47 = vpop.f32.mrf.mxu1 }
 0x10a   : > { %v1430_v58 = vpop.f32.mrf.mxu0  ;;  %v1505_v48 = vpop.eup %1504  ;;  %1084 = vst.msk [vmem:[%s1854_s25 + $0x48] sm:$0xff] %vm1074_vm1, %v1067_v37  ;;  %v1066_v50 = vadd.f32 %v1050_v28, %v1034_v41  ;;  %v1053_v51 = vmul.f32 %v891_v43, %v1785_v6  ;;  %v677_v52 = vadd.f32 %v1766_v55, %v676_v22  ;;  %v886_v0 = vadd.f32 %v1766_v55, %v885_v59 }
 0x10b   : > { %v1507_v53 = vpop.eup %1506  ;;  %1077 = vst.msk [vmem:[%s1854_s25 + $0x10] sm:$0xff] %vm1074_vm1, %v1060_v1  ;;  %v1031_v56 = vmul.f32 %v1015_v45, %v652_v49  ;;  %v1014_v54 = vadd.f32 %v1505_v48, %v1865_v7  ;;  %v1037_v57 = vmul.f32 %v1021_v46, %v682_v35  ;;  %v692_v60 = vadd.f32 %v1392_v47, %v1766_v55  ;;  %v686_v8 = vpop.f32.mrf.mxu1 }
 0x10c   : > { %v1509_v2 = vpop.eup %1508  ;;  %v968_v3 = vadd.f32 1.0, %v1507_v53  ;;  %v1046_v4 = vmul.f32 %v856_v15, %v1812_v25  ;;  %1083 = vst.msk [vmem:[%s1854_s25 + $0x40] sm:$0xff] %vm1074_vm1, %v1066_v50  ;;  %v1020_v6 = vadd.f32 %v1499_v29, %v677_v52  ;;  %v901_v5 = vadd.f32 %v1430_v58, %v1766_v55  ;;  %v895_v13 = vpop.f32.mrf.mxu0 }
 0x10d   : > { %v976_v9 = vadd.f32 1.0, %v1509_v2  ;;  %v1063_v49 = vadd.f32 %v1862_v62, %v1031_v56  ;;  %v1030_v10 = vmul.f32 %v1014_v54, %v1865_v7  ;;  %v1069_v12 = vadd.f32 %v1053_v51, %v1037_v57  ;;  %v1511_v19 = vpop.eup %1510  ;;  %v1395_v24 = vpop.f32.mrf.mxu1 }
 0x10e   : > { %1516 = vrcp.f32 %v968_v3  ;;  %v1036_v25 = vmul.f32 %v1020_v6, %v677_v52  ;;  %v1052_v14 = vmul.f32 %v886_v0, %v1792_v11  ;;  %v1023_v15 = vadd.f32 %v1503_v44, %v692_v60  ;;  %v1433_v27 = vpop.f32.mrf.mxu0 }
 0x10f   : > { %1518 = vrcp.f32 %v976_v9  ;;  %1080 = vst.msk [vmem:[%s1854_s25 + $0x28] sm:$0xff] %vm1074_vm1, %v1063_v49  ;;  %v1062_v16 = vadd.f32 %v1046_v4, %v1030_v10  ;;  %1086 = vst.msk [vmem:[%s1854_s25 + $0x58] sm:$0xff] %vm1074_vm1, %v1069_v12  ;;  %v687_v17 = vadd.f32 %v1766_v55, %v686_v8  ;;  %v896_v62 = vadd.f32 %v1766_v55, %v895_v13  ;;  %v696_v37 = vpop.f32.mrf.mxu1 }
 0x110   : > { %v1068_v7 = vadd.f32 %v1052_v14, %v1036_v25  ;;  %v1039_v20 = vmul.f32 %v1023_v15, %v692_v60  ;;  %v1055_v21 = vmul.f32 %v901_v5, %v1801_v18  ;;  %v702_v32 = vadd.f32 %v1395_v24, %v1766_v55  ;;  %v905_v43 = vpop.f32.mrf.mxu0 }
 0x111   : > { %1079 = vst.msk [vmem:[%s1854_s25 + $0x20] sm:$0xff] %vm1074_vm1, %v1062_v16  ;;  %v1022_v11 = vadd.f32 %v1511_v19, %v687_v17  ;;  %v1054_v29 = vmul.f32 %v896_v62, %v1808_v23  ;;  %v662_v33 = vadd.f32 %v1836_v30, %v1766_v55  ;;  %v871_v18 = vadd.f32 %v1838_v31, %v1766_v55 }
 0x112   : > { %1085 = vst.msk [vmem:[%s1854_s25 + $0x50] sm:$0xff] %vm1074_vm1, %v1068_v7  ;;  %v1071_v26 = vadd.f32 %v1055_v21, %v1039_v20  ;;  %v911_v22 = vadd.f32 %v1433_v27, %v1766_v55  ;;  %v697_v1 = vadd.f32 %v1766_v55, %v696_v37  ;;  %v657_v46 = vadd.f32 %v1766_v55, %v1844_v38 }
 0x113   : > { %v1038_v28 = vmul.f32 %v1022_v11, %v687_v17  ;;  %v1049_v30 = vmul.f32 %v871_v18, %v1817_v39  ;;  %v866_v47 = vadd.f32 %v1766_v55, %v1846_v40  ;;  %v906_v50 = vadd.f32 %v1766_v55, %v905_v43 }
 0x114   : > { %1088 = vst.msk [vmem:[%s1854_s25 + $0x68] sm:$0xff] %vm1074_vm1, %v1071_v26  ;;  %v1057_v31 = vmul.f32 %v911_v22, %v1820_v42 }
 0x115   : > { %v1513_v34 = vpop.eup %1512  ;;  %v1070_v35 = vadd.f32 %v1054_v29, %v1038_v28  ;;  %v1048_v0 = vmul.f32 %v866_v47, %v1825_v61  ;;  %v1056_v53 = vmul.f32 %v906_v50, %v1828_v63 }
 0x116   : > { %v1515_v59 = vpop.eup %1514  ;;  %v1017_v36 = vadd.f32 %v1513_v34, %v662_v33 }
 0x117   : > { %1087 = vst.msk [vmem:[%s1854_s25 + $0x60] sm:$0xff] %vm1074_vm1, %v1070_v35  ;;  %v1025_v23 = vadd.f32 %v1515_v59, %v702_v32 }
 0x118   : > { %v1033_v41 = vmul.f32 %v1017_v36, %v662_v33 }
 0x119   : > { %v1041_v44 = vmul.f32 %v1025_v23, %v702_v32 }
 0x11a   : > { %v1065_v45 = vadd.f32 %v1049_v30, %v1033_v41 }
 0x11b   : > { %v1517_v58 = vpop.eup %1516  ;;  %v1073_v48 = vadd.f32 %v1057_v31, %v1041_v44 }
 0x11c   : > { %v1519_v39 = vpop.eup %1518  ;;  %1082 = vst.msk [vmem:[%s1854_s25 + $0x38] sm:$0xff] %vm1074_vm1, %v1065_v45  ;;  %v1016_v51 = vadd.f32 %v1517_v58, %v657_v46 }
 0x11d   : > { %1090 = vst.msk [vmem:[%s1854_s25 + $0x78] sm:$0xff] %vm1074_vm1, %v1073_v48  ;;  %v1024_v42 = vadd.f32 %v1519_v39, %v697_v1 }
 0x11e   : > { %v1032_v52 = vmul.f32 %v1016_v51, %v657_v46 }
 0x11f   : > { %v1040_v38 = vmul.f32 %v1024_v42, %v697_v1 }
 0x120   : > { %v1064_v56 = vadd.f32 %v1048_v0, %v1032_v52 }
 0x121   : > { %v1072_v40 = vadd.f32 %v1056_v53, %v1040_v38 }
 0x122   : > { %1081 = vst.msk [vmem:[%s1854_s25 + $0x30] sm:$0xff] %vm1074_vm1, %v1064_v56 }
 0x123   : > { %1089 = vst.msk [vmem:[%s1854_s25 + $0x70] sm:$0xff] %vm1074_vm1, %v1072_v40 }
 0x124 PF: > { %s15_s18 = sadd.s32 1, %s1526_s18  }
 0x125   : > { %p12_p4 = scmp.ge.s32.totalorder %s15_s18, 4  }
 0x127   :  { %14 = sbr.rel (!%p12_p4) target bundleno = 1 (0x1), region = 76 }

</bundles_post_ra>
